<compile_context>
chip_gen: v5e
topology: v5e:2x2
jax: 0.10.0
libtpu: 0.0.40
codegen_flags: <defaults>
</compile_context>

<pallas_src>
import functools

import jax
import jax.numpy as jnp
from jax.experimental import pallas as pl
from jax.experimental.pallas import tpu as pltpu

# TODO(synk): stands in for Vocab.special2index('<cls>'); the vocab table is
# not available in this self-contained script.
CLS_ID = 1


def _prepend_cls_kernel(x_ref, len_ref, o_ref, *, cls_id):
    """One grid step = one tile of TB batch rows.

    x_ref   : VMEM (TB, T)     padded token ids
    len_ref : VMEM (TB, 1)     per-row valid lengths
    o_ref   : VMEM (TB, T+1)   output: [cls, tokens..., zero padding]
    """
    x = x_ref[...]                       # (TB, T)
    lens = len_ref[...]                  # (TB, 1)
    tb, t = x.shape

    # Prepend the <cls> column: a one-lane right shift of the token rows.
    cls_col = jnp.full((tb, 1), cls_id, dtype=x.dtype)
    y = jnp.concatenate([cls_col, x], axis=1)              # (TB, T+1)

    # Zero everything past the new valid prefix (col 0 = cls, cols 1..len = tokens).
    col = jax.lax.broadcasted_iota(jnp.int32, (tb, t + 1), 1)
    valid = col <= lens                                    # broadcast (TB,1) -> (TB,T+1)
    o_ref[...] = jnp.where(valid, y, jnp.zeros_like(y))    # single lane-dense store


def prepend_cls(padded_x, lengths, cls_id=CLS_ID, *, tile_b=256):
    """padded_x: [B, T] int tokens, lengths: [B] -> ([B, T+1] tokens, [B] new lengths)."""
    B, T = padded_x.shape
    lengths = lengths.astype(jnp.int32)

    # Row-tile size: whole batch when small, otherwise a sublane-aligned tile.
    if B <= tile_b:
        tb = B
    else:
        tb = tile_b - (tile_b % 8) if tile_b % 8 else tile_b
    grid = (pl.cdiv(B, tb),)

    out = pl.pallas_call(
        functools.partial(_prepend_cls_kernel, cls_id=cls_id),
        out_shape=jax.ShapeDtypeStruct((B, T + 1), padded_x.dtype),
        grid=grid,
        in_specs=[
            pl.BlockSpec((tb, T), lambda i: (i, 0)),       # token tile
            pl.BlockSpec((tb, 1), lambda i: (i, 0)),       # per-row lengths
        ],
        out_specs=pl.BlockSpec((tb, T + 1), lambda i: (i, 0)),
        compiler_params=pltpu.CompilerParams(
            dimension_semantics=("parallel",)),
    )(padded_x, lengths.reshape(B, 1))

    # PackedSequence re-packing (batch_sizes / sorted_indices) is layout-only
    # bookkeeping; padded tensor + (lengths + 1) is its stand-in.
    new_lengths = lengths + 1
    return out, new_lengths


def reference(padded_x, lengths, cls_id=CLS_ID):
    """Pure-JAX reference mimicking the per-sequence torch loop."""
    B, T = padded_x.shape
    rows = []
    for i in range(B):
        li = int(lengths[i])
        row = jnp.concatenate([
            jnp.full((1,), cls_id, padded_x.dtype),
            padded_x[i, :li],
            jnp.zeros((T - li,), padded_x.dtype),
        ])
        rows.append(row)
    return jnp.stack(rows, axis=0), lengths.astype(jnp.int32) + 1


if __name__ == "__main__":
    key = jax.random.PRNGKey(0)
    k1, k2, k3 = jax.random.split(key, 3)

    # Case 1: small shapes consistent with a packed-sequence batch (B=2, T=8).
    B, T = 2, 8
    lengths = jnp.array([8, 5], dtype=jnp.int32)
    tok = jax.random.randint(k1, (B, T), minval=4, maxval=100, dtype=jnp.int32)
    # Zero the padding of the input, as pad_packed_sequence would produce.
    padded_x = jnp.where(jnp.arange(T)[None, :] < lengths[:, None], tok, 0)

    out, new_lens = prepend_cls(padded_x, lengths)
    out = jax.block_until_ready(out)
    ref_out, ref_lens = reference(padded_x, lengths)
    assert out.shape == (B, T + 1)
    assert jnp.array_equal(out, ref_out), "mismatch vs reference (case 1)"
    assert jnp.array_equal(new_lens, ref_lens), "length mismatch (case 1)"

    # Case 2: exercises the multi-step row-tiled grid (B=16, T=24, TB=8).
    B2, T2, TB2 = 16, 24, 8
    lengths2 = jax.random.randint(k2, (B2,), minval=1, maxval=T2 + 1, dtype=jnp.int32)
    tok2 = jax.random.randint(k3, (B2, T2), minval=4, maxval=100, dtype=jnp.int32)
    padded_x2 = jnp.where(jnp.arange(T2)[None, :] < lengths2[:, None], tok2, 0)

    out2, new_lens2 = prepend_cls(padded_x2, lengths2, tile_b=TB2)
    out2 = jax.block_until_ready(out2)
    ref_out2, ref_lens2 = reference(padded_x2, lengths2)
    assert jnp.array_equal(out2, ref_out2), "mismatch vs reference (case 2)"
    assert jnp.array_equal(new_lens2, ref_lens2), "length mismatch (case 2)"

    # TODO(synk): PackedSequence construction itself (batch_sizes /
    # sorted_indices / unsorted_indices) has no compute content; the padded
    # tensor + lengths pair is used as its stand-in.
    print("KERNEL_OK")
</pallas_src>

<mosaic_0001>
module attributes {stable_mosaic.version = 11 : i64} {
  func.func @_prepend_cls_kernel(%arg0: i32, %arg1: memref<2x8xi32, #tpu.memory_space<vmem>>, %arg2: memref<2x1xi32, #tpu.memory_space<vmem>>, %arg3: memref<2x9xi32, #tpu.memory_space<vmem>>) attributes {dimension_semantics = [#tpu.dimension_semantics<parallel>], iteration_bounds = array<i64: 1>, scalar_prefetch = 0 : i64, scratch_operands = 0 : i64, tpu.core_type = #tpu.core_type<tc>, window_params = [{transform_indices = @transform_0, window_bounds = array<i64: 2, 8>}, {transform_indices = @transform_1, window_bounds = array<i64: 2, 1>}, {transform_indices = @transform_2, window_bounds = array<i64: 2, 9>}]} {
    %c0 = arith.constant 0 : index
    %c0_0 = arith.constant 0 : index
    %0 = vector.load %arg1[%c0, %c0_0] : memref<2x8xi32, #tpu.memory_space<vmem>>, vector<2x8xi32>
    %c0_1 = arith.constant 0 : index
    %c0_2 = arith.constant 0 : index
    %1 = vector.load %arg2[%c0_1, %c0_2] : memref<2x1xi32, #tpu.memory_space<vmem>>, vector<2x1xi32>
    %c1_i32 = arith.constant 1 : i32
    %2 = vector.broadcast %c1_i32 : i32 to vector<2x1xi32>
    %3 = tpu.concatenate %2, %0 in 1 : vector<2x1xi32>, vector<2x8xi32> -> vector<2x9xi32>
    %4 = tpu.iota {dimensions = array<i32: 1>} : vector<2x9xi32>
    %5 = vector.broadcast %1 : vector<2x1xi32> to vector<2x9xi32>
    %6 = arith.cmpi sle, %4, %5 : vector<2x9xi32>
    %c0_i32 = arith.constant 0 : i32
    %7 = vector.broadcast %c0_i32 : i32 to vector<2x9xi32>
    %8 = arith.select %6, %3, %7 : vector<2x9xi1>, vector<2x9xi32>
    %c0_3 = arith.constant 0 : index
    %c0_4 = arith.constant 0 : index
    %9 = vector.load %arg3[%c0_3, %c0_4] : memref<2x9xi32, #tpu.memory_space<vmem>>, vector<2x9xi32>
    tpu.vector_store %arg3[%c0_3, %c0_4], %8 {strides = array<i32>} : memref<2x9xi32, #tpu.memory_space<vmem>>, vector<2x9xi32>,
    return
  }
  func.func @transform_0(%arg0: i32) -> (i32, i32) {
    %c0_i32 = arith.constant 0 : i32
    %c0_i32_0 = arith.constant 0 : i32
    return %arg0, %c0_i32 : i32, i32
  }
  func.func @transform_1(%arg0: i32) -> (i32, i32) {
    %c0_i32 = arith.constant 0 : i32
    %c0_i32_0 = arith.constant 0 : i32
    return %arg0, %c0_i32 : i32, i32
  }
  func.func @transform_2(%arg0: i32) -> (i32, i32) {
    %c0_i32 = arith.constant 0 : i32
    %c0_i32_0 = arith.constant 0 : i32
    return %arg0, %c0_i32 : i32, i32
  }
}

</mosaic_0001>

<bundles_post_ra>
// kernel: tpu_custom_call.1
= control target key start
LH: loop header
LB: loop body
LE: loop exit
PB: predicated region body
PF: predicated region fallthrough
CT: control target
= control target key end

     0   :  { %s73_s11 = smov 1   ;;  %s100_s0 = inlined_call_operand.vmem [shape: s32[2,8], index: 0, kind: input, shape index: {}]   ;;  %s101_s1 = inlined_call_operand.vmem [shape: s32[2,1], index: 1, kind: input, shape index: {}]   ;;  %s102_s2 = inlined_call_operand.hbm [shape: s32[2,9], index: 2, kind: output, shape index: {}]  }
   0x1   :  { %v12_v0 = vld [vmem:[%s100_s0] sm:$0x3] }
   0x2   :  { %14 = vrot.lane.b32.xlu0 %v12_v0, %s73_s11 }
   0x3   :  { %7 = vsyncpa [#allocation3], 0  ;;  %v74_v1 = vmov 0   ;;  %v13_v2 = vld [vmem:[%s101_s1] sm:$0x3]  ;;  %v18_v4 = vlaneseq  ;;  %vm16_vm0 = vcmask 7168  }
   0x4   :  { %46 = vset.pattern.permute.xlu0 %v74_v1  ;;  %s75_s14 = smov [#allocation2]   ;;  %s34_s0 = sshll.u32 %s102_s2, 4  ;;  %vm25_vm1 = vcmask 66560   ;;  %s35_s0 = int_to_ptr.hbm [resolvable:$true] %s34_s0 }
   0x5   :  { %v19_v5 = vand.u32 127, %v18_v4  ;;  %s32_s15 = sshll.u32 %s75_s14, 4  ;;  %s33_s15 = int_to_ptr.vmem [resolvable:$true] %s32_s15 }
   0xa   :  { %21 = vperm.xlu0 %46, %v13_v2  }
  0x74   :  { %v15_v3 = vpop.permute.xlu0 %14 }
  0x75   :  { %v17_v7 = vsel %vm16_vm0, 1, %v15_v3 }
  0x7c   :  { %v22_v6 = vpop.permute.xlu0 %21 }
  0x7d   :  { %vm23_vm2 = vcmp.le.s32.totalorder %v19_v5, %v22_v6 }
  0x7e   :  { %v24_v8 = vsel %vm23_vm2, %v17_v7, 0 }
  0x7f   :  { %26 = vst.msk [vmem:[#allocation2] sm:$0x3] %vm25_vm1, %v24_v8 }
  0x80   :  { %37 = dma.vmem_to_hbm [thread:$0]  %s33_s15, 32, %s35_s0, [#allocation3]  }
  0x81   :  { %71 = dma.done.wait [#allocation3], 32  }
  0x82   :  { %72 = vsyncadd [#allocation3], 4294967264 }
  0x83   :  { %42 = vsyncpa [#allocation3], 1 }

</bundles_post_ra>
